<compile_context>
chip_gen: v7x
topology: tpu7x:2x2x1
jax: 0.10.0
libtpu: 0.0.40
codegen_flags: <defaults>
</compile_context>

<pallas_src>
import functools

import jax
import jax.numpy as jnp
from jax.experimental import pallas as pl
from jax.experimental.pallas import tpu as pltpu


def _round_up(n, m):
    return ((n + m - 1) // m) * m


def dqn_mlp_kernel(x_ref, w1_ref, b1_ref, w2_ref, b2_ref, w3_ref, b3_ref, o_ref):
    # x_ref : (TB, S) f32     w1_ref: (S, H) bf16   b1_ref: (1, H) f32
    # w2_ref: (H, H)  bf16    b2_ref: (1, H) f32
    # w3_ref: (H, A)  bf16    b3_ref: (1, A) f32    o_ref : (TB, A) f32
    cd = w1_ref.dtype  # MXU operand dtype (bf16)

    x = x_ref[...].astype(cd)

    h1 = jnp.dot(x, w1_ref[...], preferred_element_type=jnp.float32) + b1_ref[...]
    h1 = jnp.maximum(h1, 0.0)

    h2 = jnp.dot(h1.astype(cd), w2_ref[...],
                 preferred_element_type=jnp.float32) + b2_ref[...]
    h2 = jnp.maximum(h2, 0.0)

    out = jnp.dot(h2.astype(cd), w3_ref[...],
                  preferred_element_type=jnp.float32) + b3_ref[...]
    o_ref[...] = out.astype(o_ref.dtype)


def prepare_dqn_params(params, compute_dtype=jnp.bfloat16):
    """One-time weight prep (hoisted out of the per-call forward path).

    Casts weights to the MXU operand dtype; biases stay f32 for the VPU adds.
    """
    w1, b1, w2, b2, w3, b3 = params
    return (w1.astype(compute_dtype), b1.astype(jnp.float32),
            w2.astype(compute_dtype), b2.astype(jnp.float32),
            w3.astype(compute_dtype), b3.astype(jnp.float32))


def _choose_batch_tile(B, *, max_tile=2048, split_threshold=1024):
    """Pick the batch tile size.

    * B <= split_threshold: one grid step (kernel is fixed-overhead bound).
    * Larger B: at least 2 tiles (so the "parallel" batch axis can shard
      across v7x's 2 TensorCores), each capped at max_tile rows.
    """
    Bp = _round_up(B, 8)
    if Bp <= split_threshold:
        return Bp
    return min(max_tile, _round_up(pl.cdiv(Bp, 2), 8))


@functools.partial(jax.jit, static_argnames=("max_batch_tile",))
def dqn_forward(x, prepared_params, max_batch_tile=2048):
    """Fused DQN forward. x: (B, state_size) f32 -> (B, action_size) f32.

    `prepared_params` must come from prepare_dqn_params().
    """
    w1, b1, w2, b2, w3, b3 = prepared_params
    B, S = x.shape
    H = w1.shape[1]
    A = w3.shape[1]

    TB = _choose_batch_tile(B, max_tile=max_batch_tile)
    Bp = _round_up(B, TB)
    if Bp != B:  # only pad when necessary (padded rows compute garbage, sliced off)
        x = jnp.zeros((Bp, S), x.dtype).at[:B].set(x)
    grid = (Bp // TB,)

    # Weights/biases: same block every grid step -> loaded once, VMEM-resident.
    def resident(shape):
        return pl.BlockSpec(shape, lambda i: (0,) * len(shape))

    flops = 2 * Bp * (S * H + H * H + H * A)
    bytes_accessed = (Bp * S * x.dtype.itemsize            # x in
                      + Bp * A * 4                         # out
                      + (S * H + H * H + H * A) * w1.dtype.itemsize   # weights
                      + (2 * H + A) * 4)                   # biases

    out = pl.pallas_call(
        dqn_mlp_kernel,
        out_shape=jax.ShapeDtypeStruct((Bp, A), jnp.float32),
        grid=grid,
        in_specs=[
            pl.BlockSpec((TB, S), lambda i: (i, 0)),        # x: tiled over batch
            resident(w1.shape), resident(b1.shape),
            resident(w2.shape), resident(b2.shape),
            resident(w3.shape), resident(b3.shape),
        ],
        out_specs=pl.BlockSpec((TB, A), lambda i: (i, 0)),
        compiler_params=pltpu.CompilerParams(
            dimension_semantics=("parallel",),  # shards batch tiles on v7x's 2 TCs
        ),
        cost_estimate=pl.CostEstimate(
            flops=flops, transcendentals=0, bytes_accessed=bytes_accessed),
    )(x, w1, b1, w2, b2, w3, b3)

    return out[:B] if Bp != B else out


def init_dqn_params(key, state_size, action_size, hidden=128):
    """Deterministic init mimicking nn.Linear's U(-1/sqrt(fan_in), 1/sqrt(fan_in))."""
    ks = jax.random.split(key, 6)

    def linear(kw, kb, fan_in, fan_out):
        bound = 1.0 / jnp.sqrt(jnp.float32(fan_in))
        w = jax.random.uniform(kw, (fan_in, fan_out), jnp.float32, -bound, bound)
        b = jax.random.uniform(kb, (1, fan_out), jnp.float32, -bound, bound)
        return w, b

    w1, b1 = linear(ks[0], ks[1], state_size, hidden)
    w2, b2 = linear(ks[2], ks[3], hidden, hidden)
    w3, b3 = linear(ks[4], ks[5], hidden, action_size)
    return (w1, b1, w2, b2, w3, b3)


def dqn_forward_ref(x, params, compute_dtype=jnp.float32):
    """Pure-JAX reference (same operand dtype as the kernel, f32 accumulation)."""
    w1, b1, w2, b2, w3, b3 = params
    cd = compute_dtype
    h1 = jnp.maximum(
        jnp.dot(x.astype(cd), w1.astype(cd), preferred_element_type=jnp.float32) + b1, 0.0)
    h2 = jnp.maximum(
        jnp.dot(h1.astype(cd), w2.astype(cd), preferred_element_type=jnp.float32) + b2, 0.0)
    return jnp.dot(h2.astype(cd), w3.astype(cd), preferred_element_type=jnp.float32) + b3


if __name__ == "__main__":
    # FrozenLake 4x4: state_size=16 (one-hot), action_size=4.
    # Replay-buffer-style batch of 256 rows -> single grid step (overhead-bound
    # regime; one tile minimizes per-step pipeline cost).
    STATE_SIZE, ACTION_SIZE, BATCH = 16, 4, 256

    key = jax.random.PRNGKey(0)
    k_params, k_x = jax.random.split(key)

    raw_params = init_dqn_params(k_params, STATE_SIZE, ACTION_SIZE)
    params = prepare_dqn_params(raw_params)  # bf16 casts done once, not per call
    x = jax.random.normal(k_x, (BATCH, STATE_SIZE), jnp.float32)

    out = jax.block_until_ready(dqn_forward(x, params))
    ref_bf16 = jax.block_until_ready(dqn_forward_ref(x, raw_params, jnp.bfloat16))
    ref_f32 = jax.block_until_ready(dqn_forward_ref(x, raw_params, jnp.float32))

    assert out.shape == (BATCH, ACTION_SIZE), out.shape
    # Kernel vs matching bf16-operand reference: near-exact (same rounding).
    assert jnp.allclose(out, ref_bf16, atol=1e-2, rtol=1e-2), "mismatch vs bf16 reference"
    # Sanity vs full-f32 reference: bf16 operand rounding only.
    assert jnp.allclose(out, ref_f32, atol=5e-2, rtol=5e-2), "mismatch vs f32 reference"

    # TODO(synk): optional argmax-fused variant (emit (TB,1) int32 actions) for
    # the single-state acting path would remove the Q-value writeback entirely.
    print("KERNEL_OK")
</pallas_src>

<mosaic_0001>
module attributes {stable_mosaic.version = 11 : i64} {
  func.func @dqn_mlp_kernel(%arg0: i32, %arg1: memref<256x16xf32, #tpu.memory_space<vmem>>, %arg2: memref<16x128xbf16, #tpu.memory_space<vmem>>, %arg3: memref<1x128xf32, #tpu.memory_space<vmem>>, %arg4: memref<128x128xbf16, #tpu.memory_space<vmem>>, %arg5: memref<1x128xf32, #tpu.memory_space<vmem>>, %arg6: memref<128x4xbf16, #tpu.memory_space<vmem>>, %arg7: memref<1x4xf32, #tpu.memory_space<vmem>>, %arg8: memref<256x4xf32, #tpu.memory_space<vmem>>) attributes {dimension_semantics = [#tpu.dimension_semantics<parallel>], iteration_bounds = array<i64: 1>, scalar_prefetch = 0 : i64, scratch_operands = 0 : i64, tpu.core_type = #tpu.core_type<tc>, window_params = [{transform_indices = @transform_0, window_bounds = array<i64: 256, 16>}, {pipeline_mode = #tpu.pipeline_mode<synchronous>, transform_indices = @transform_1, window_bounds = array<i64: 16, 128>}, {pipeline_mode = #tpu.pipeline_mode<synchronous>, transform_indices = @transform_2, window_bounds = array<i64: 1, 128>}, {pipeline_mode = #tpu.pipeline_mode<synchronous>, transform_indices = @transform_3, window_bounds = array<i64: 128, 128>}, {pipeline_mode = #tpu.pipeline_mode<synchronous>, transform_indices = @transform_4, window_bounds = array<i64: 1, 128>}, {pipeline_mode = #tpu.pipeline_mode<synchronous>, transform_indices = @transform_5, window_bounds = array<i64: 128, 4>}, {pipeline_mode = #tpu.pipeline_mode<synchronous>, transform_indices = @transform_6, window_bounds = array<i64: 1, 4>}, {transform_indices = @transform_7, window_bounds = array<i64: 256, 4>}]} {
    %c0 = arith.constant 0 : index
    %c0_0 = arith.constant 0 : index
    %0 = vector.load %arg1[%c0, %c0_0] : memref<256x16xf32, #tpu.memory_space<vmem>>, vector<256x16xf32>
    %1 = arith.truncf %0 : vector<256x16xf32> to vector<256x16xbf16>
    %c0_1 = arith.constant 0 : index
    %c0_2 = arith.constant 0 : index
    %2 = vector.load %arg2[%c0_1, %c0_2] : memref<16x128xbf16, #tpu.memory_space<vmem>>, vector<16x128xbf16>
    %cst = arith.constant dense<0.000000e+00> : vector<256x128xf32>
    %3 = tpu.matmul %1, %2, %cst {dimension_numbers = #tpu.dot_dimension_numbers<[1], [0], [0], [1], [0, 0, 1, 1], [], []>} : vector<256x16xbf16>, vector<16x128xbf16>, vector<256x128xf32> -> vector<256x128xf32>
    %c0_3 = arith.constant 0 : index
    %c0_4 = arith.constant 0 : index
    %4 = vector.load %arg3[%c0_3, %c0_4] : memref<1x128xf32, #tpu.memory_space<vmem>>, vector<1x128xf32>
    %5 = vector.broadcast %4 : vector<1x128xf32> to vector<256x128xf32>
    %6 = arith.addf %3, %5 : vector<256x128xf32>
    %cst_5 = arith.constant 0.000000e+00 : f32
    %7 = vector.broadcast %cst_5 : f32 to vector<256x128xf32>
    %8 = arith.maximumf %6, %7 : vector<256x128xf32>
    %9 = arith.truncf %8 : vector<256x128xf32> to vector<256x128xbf16>
    %c0_6 = arith.constant 0 : index
    %c0_7 = arith.constant 0 : index
    %10 = vector.load %arg4[%c0_6, %c0_7] : memref<128x128xbf16, #tpu.memory_space<vmem>>, vector<128x128xbf16>
    %cst_8 = arith.constant dense<0.000000e+00> : vector<256x128xf32>
    %11 = tpu.matmul %9, %10, %cst_8 {dimension_numbers = #tpu.dot_dimension_numbers<[1], [0], [0], [1], [0, 0, 1, 1], [], []>} : vector<256x128xbf16>, vector<128x128xbf16>, vector<256x128xf32> -> vector<256x128xf32>
    %c0_9 = arith.constant 0 : index
    %c0_10 = arith.constant 0 : index
    %12 = vector.load %arg5[%c0_9, %c0_10] : memref<1x128xf32, #tpu.memory_space<vmem>>, vector<1x128xf32>
    %13 = vector.broadcast %12 : vector<1x128xf32> to vector<256x128xf32>
    %14 = arith.addf %11, %13 : vector<256x128xf32>
    %cst_11 = arith.constant 0.000000e+00 : f32
    %15 = vector.broadcast %cst_11 : f32 to vector<256x128xf32>
    %16 = arith.maximumf %14, %15 : vector<256x128xf32>
    %17 = arith.truncf %16 : vector<256x128xf32> to vector<256x128xbf16>
    %c0_12 = arith.constant 0 : index
    %c0_13 = arith.constant 0 : index
    %18 = vector.load %arg6[%c0_12, %c0_13] : memref<128x4xbf16, #tpu.memory_space<vmem>>, vector<128x4xbf16>
    %cst_14 = arith.constant dense<0.000000e+00> : vector<256x4xf32>
    %19 = tpu.matmul %17, %18, %cst_14 {dimension_numbers = #tpu.dot_dimension_numbers<[1], [0], [0], [1], [0, 0, 1, 1], [], []>} : vector<256x128xbf16>, vector<128x4xbf16>, vector<256x4xf32> -> vector<256x4xf32>
    %c0_15 = arith.constant 0 : index
    %c0_16 = arith.constant 0 : index
    %20 = vector.load %arg7[%c0_15, %c0_16] : memref<1x4xf32, #tpu.memory_space<vmem>>, vector<1x4xf32>
    %21 = vector.broadcast %20 : vector<1x4xf32> to vector<256x4xf32>
    %22 = arith.addf %19, %21 : vector<256x4xf32>
    %c0_17 = arith.constant 0 : index
    %c0_18 = arith.constant 0 : index
    %23 = vector.load %arg8[%c0_17, %c0_18] : memref<256x4xf32, #tpu.memory_space<vmem>>, vector<256x4xf32>
    tpu.vector_store %arg8[%c0_17, %c0_18], %22 {strides = array<i32>} : memref<256x4xf32, #tpu.memory_space<vmem>>, vector<256x4xf32>,
    return
  }
  func.func @transform_0(%arg0: i32) -> (i32, i32) {
    %c0_i32 = arith.constant 0 : i32
    %c0_i32_0 = arith.constant 0 : i32
    return %arg0, %c0_i32 : i32, i32
  }
  func.func @transform_1(%arg0: i32) -> (i32, i32) {
    %c0_i32 = arith.constant 0 : i32
    %c0_i32_0 = arith.constant 0 : i32
    %c0_i32_1 = arith.constant 0 : i32
    return %c0_i32, %c0_i32_0 : i32, i32
  }
  func.func @transform_2(%arg0: i32) -> (i32, i32) {
    %c0_i32 = arith.constant 0 : i32
    %c0_i32_0 = arith.constant 0 : i32
    %c0_i32_1 = arith.constant 0 : i32
    return %c0_i32, %c0_i32_0 : i32, i32
  }
  func.func @transform_3(%arg0: i32) -> (i32, i32) {
    %c0_i32 = arith.constant 0 : i32
    %c0_i32_0 = arith.constant 0 : i32
    %c0_i32_1 = arith.constant 0 : i32
    return %c0_i32, %c0_i32_0 : i32, i32
  }
  func.func @transform_4(%arg0: i32) -> (i32, i32) {
    %c0_i32 = arith.constant 0 : i32
    %c0_i32_0 = arith.constant 0 : i32
    %c0_i32_1 = arith.constant 0 : i32
    return %c0_i32, %c0_i32_0 : i32, i32
  }
  func.func @transform_5(%arg0: i32) -> (i32, i32) {
    %c0_i32 = arith.constant 0 : i32
    %c0_i32_0 = arith.constant 0 : i32
    %c0_i32_1 = arith.constant 0 : i32
    return %c0_i32, %c0_i32_0 : i32, i32
  }
  func.func @transform_6(%arg0: i32) -> (i32, i32) {
    %c0_i32 = arith.constant 0 : i32
    %c0_i32_0 = arith.constant 0 : i32
    %c0_i32_1 = arith.constant 0 : i32
    return %c0_i32, %c0_i32_0 : i32, i32
  }
  func.func @transform_7(%arg0: i32) -> (i32, i32) {
    %c0_i32 = arith.constant 0 : i32
    %c0_i32_0 = arith.constant 0 : i32
    return %arg0, %c0_i32 : i32, i32
  }
}

</mosaic_0001>

<bundles_post_ra>
// kernel: dqn_forward.1
= control target key start
LH: loop header
LB: loop body
LE: loop exit
PB: predicated region body
PF: predicated region fallthrough
CT: control target
= control target key end

     0   :  { %vm90_vm0 = vcmask 130048   ;;  %vm860_vm1 = vcmask 31744   ;;  %s1595_s1 = inlined_call_operand.vmem [shape: bf16[16,128], index: 1, kind: input, shape index: {}]   ;;  %s1596_s0 = inlined_call_operand.vmem [shape: f32[256,16], index: 0, kind: input, shape index: {}]   ;;  %s1597_s3 = inlined_call_operand.vmem [shape: bf16[128,128], index: 3, kind: input, shape index: {}]   ;;  %s1598_s5 = inlined_call_operand.vmem [shape: bf16[128,4], index: 5, kind: input, shape index: {}]   ;;  %s1599_s2 = inlined_call_operand.vmem [shape: f32[1,128], index: 2, kind: input, shape index: {}]   ;;  %s1600_s4 = inlined_call_operand.vmem [shape: f32[1,128], index: 4, kind: input, shape index: {}]   ;;  %s1601_s6 = inlined_call_operand.vmem [shape: f32[1,4], index: 6, kind: input, shape index: {}]   ;;  %s1602_s7 = inlined_call_operand.vmem [shape: f32[256,4], index: 7, kind: output, shape index: {}]  }
   0x1   :  { %v1130_v0 = vld [vmem:[%s1595_s1] sm:$0xff]   ;;  %v28_v2 = vld [vmem:[%s1596_s0 + $0x8] sm:$0xff]  ;;  %v29_v3 = vld [vmem:[%s1596_s0 + $0x10] sm:$0xff] }
   0x2   :  { %v27_v1 = vld [vmem:[%s1596_s0] sm:$0xff]  ;;  %998 = vmatprep.subr.bf16.mxu0 %v1130_v0  ;;  %v30_v5 = vld [vmem:[%s1596_s0 + $0x18] sm:$0xff]  ;;  %v32_v7 = vld [vmem:[%s1596_s0 + $0x28] sm:$0xff]  ;;  %1128 = vmatprep.subr.bf16.mxu1 %v1130_v0 }
   0x3   :  { %v59_v4 = vpack.c.bf16 %v28_v2, %v27_v1  ;;  %v31_v6 = vld [vmem:[%s1596_s0 + $0x20] sm:$0xff]  ;;  %999 = vmatpush3.bf16.msra.mxu0 %v1130_v0  ;;  %v60_v8 = vpack.c.bf16 %v30_v5, %v29_v3  ;;  %1129 = vmatpush3.bf16.msra.mxu1 %v1130_v0  ;;  %v33_v10 = vld [vmem:[%s1596_s0 + $0x30] sm:$0xff]  ;;  %v34_v11 = vld [vmem:[%s1596_s0 + $0x38] sm:$0xff] }
   0x4   :  { %v61_v9 = vpack.c.bf16 %v32_v7, %v31_v6  ;;  %v43_v12 = vld [vmem:[%s1596_s0 + $0x80] sm:$0xff]  ;;  %v44_v13 = vld [vmem:[%s1596_s0 + $0x88] sm:$0xff]  ;;  %v45_v15 = vld [vmem:[%s1596_s0 + $0x90] sm:$0xff]  ;;  %v62_v23 = vpack.c.bf16 %v34_v11, %v33_v10 }
   0x5   :  { %1000 = vmatprep.mubr.msk.bf16.mxu0 %vm90_vm0, %v59_v4  ;;  %v67_v14 = vpack.c.bf16 %v44_v13, %v43_v12  ;;  %v46_v16 = vld [vmem:[%s1596_s0 + $0x98] sm:$0xff]  ;;  %v47_v17 = vld [vmem:[%s1596_s0 + $0xa0] sm:$0xff]  ;;  %v36_v19 = vld [vmem:[%s1596_s0 + $0x48] sm:$0xff] }
   0x6   :  { %1001 = vmatmul.mubr.msk.bf16.vlgmr.msra.gmra.mrb[0].mxu0 %vm90_vm0, %v60_v8  ;;  %v35_v18 = vld [vmem:[%s1596_s0 + $0x40] sm:$0xff]  ;;  %v68_v20 = vpack.c.bf16 %v46_v16, %v45_v15  ;;  %v48_v21 = vld [vmem:[%s1596_s0 + $0xa8] sm:$0xff]  ;;  %v49_v24 = vld [vmem:[%s1596_s0 + $0xb0] sm:$0xff] }
   0x7   :  { %1004 = vmatprep.mubr.msk.bf16.mxu0 %vm90_vm0, %v61_v9  ;;  %1016 = vmatprep.mubr.msk.bf16.mxu1 %vm90_vm0, %v67_v14  ;;  %v69_v22 = vpack.c.bf16 %v48_v21, %v47_v17  ;;  %v50_v25 = vld [vmem:[%s1596_s0 + $0xb8] sm:$0xff]  ;;  %v63_v26 = vpack.c.bf16 %v36_v19, %v35_v18  ;;  %v51_v27 = vld [vmem:[%s1596_s0 + $0xc0] sm:$0xff]  ;;  %v52_v28 = vld [vmem:[%s1596_s0 + $0xc8] sm:$0xff] }
   0x8   :  { %1017 = vmatmul.mubr.msk.bf16.vlgmr.msra.gmra.mrb[0].mxu1 %vm90_vm0, %v68_v20  ;;  %v1131_v29 = vld [vmem:[%s1597_s3] sm:$0xff]   ;;  %v37_v30 = vld [vmem:[%s1596_s0 + $0x50] sm:$0xff]  ;;  %v38_v31 = vld [vmem:[%s1596_s0 + $0x58] sm:$0xff]  ;;  %v70_v34 = vpack.c.bf16 %v50_v25, %v49_v24  ;;  %v71_v36 = vpack.c.bf16 %v52_v28, %v51_v27 }
   0x9   :  { %1020 = vmatprep.mubr.msk.bf16.mxu1 %vm90_vm0, %v69_v22  ;;  %v1132_v32 = vld [vmem:[%s1597_s3 + $0x8] sm:$0xff]   ;;  %v39_v33 = vld [vmem:[%s1596_s0 + $0x60] sm:$0xff]  ;;  %1032 = vmatprep.subr.bf16.mxu1 %v1131_v29  ;;  %v1133_v37 = vld [vmem:[%s1597_s3 + $0x10] sm:$0xff]   ;;  %v64_v38 = vpack.c.bf16 %v38_v31, %v37_v30 }
   0xa   :  { %v40_v35 = vld [vmem:[%s1596_s0 + $0x68] sm:$0xff]  ;;  %1033 = vmatpush3.bf16.msra.mxu1 %v1131_v29  ;;  %v53_v40 = vld [vmem:[%s1596_s0 + $0xd0] sm:$0xff]  ;;  %v54_v41 = vld [vmem:[%s1596_s0 + $0xd8] sm:$0xff] }
   0xb   :  { %1034 = vmatprep.subr.bf16.mxu1 %v1132_v32  ;;  %v65_v39 = vpack.c.bf16 %v40_v35, %v39_v33  ;;  %v55_v42 = vld [vmem:[%s1596_s0 + $0xe0] sm:$0xff]  ;;  %v56_v43 = vld [vmem:[%s1596_s0 + $0xe8] sm:$0xff]  ;;  %v1134_v44 = vld [vmem:[%s1597_s3 + $0x18] sm:$0xff]   ;;  %v72_v45 = vpack.c.bf16 %v54_v41, %v53_v40 }
   0xc   :  { %v41_v46 = vld [vmem:[%s1596_s0 + $0x70] sm:$0xff]  ;;  %v42_v47 = vld [vmem:[%s1596_s0 + $0x78] sm:$0xff]  ;;  %v73_v48 = vpack.c.bf16 %v56_v43, %v55_v42  ;;  %v1135_v49 = vld [vmem:[%s1597_s3 + $0x20] sm:$0xff]  }
   0xd   :  { %v66_v50 = vpack.c.bf16 %v42_v47, %v41_v46  ;;  %v57_v51 = vld [vmem:[%s1596_s0 + $0xf0] sm:$0xff]  ;;  %v58_v52 = vld [vmem:[%s1596_s0 + $0xf8] sm:$0xff]  ;;  %v1136_v53 = vld [vmem:[%s1597_s3 + $0x28] sm:$0xff]  }
   0xe   :  { %1005 = vmatmul.mubr.msk.bf16.gmra.mrb[4].mxu0 %vm90_vm0, %v62_v23  ;;  %1035 = vmatpush3.bf16.msra.mxu1 %v1132_v32  ;;  %v74_v54 = vpack.c.bf16 %v58_v52, %v57_v51  ;;  %v1137_v55 = vld [vmem:[%s1597_s3 + $0x30] sm:$0xff]   ;;  %v1138_v56 = vld [vmem:[%s1597_s3 + $0x38] sm:$0xff]   ;;  %v1139_v57 = vld [vmem:[%s1598_s5] sm:$0xff]  }
   0xf   :  { %1008 = vmatprep.mubr.msk.bf16.mxu0 %vm90_vm0, %v63_v26  ;;  %1036 = vmatprep.subr.bf16.mxu1 %v1133_v37  ;;  %v1140_v58 = vld [vmem:[%s1598_s5 + $0x8] sm:$0xff]   ;;  %v1141_v59 = vld [vmem:[%s1598_s5 + $0x10] sm:$0xff]   ;;  %v1142_v60 = vld [vmem:[%s1598_s5 + $0x18] sm:$0xff]  }
  0x10   :  { %1021 = vmatmul.mubr.msk.bf16.gmra.mrb[4].mxu1 %vm90_vm0, %v70_v34  ;;  %1080 = vmatprep.subr.bf16.mxu0 %v1139_v57  ;;  %v1143_v61 = vld [vmem:[%s1598_s5 + $0x20] sm:$0xff]   ;;  %v1144_v62 = vld [vmem:[%s1598_s5 + $0x28] sm:$0xff]  }
  0x11   :  { %1024 = vmatprep.mubr.msk.bf16.mxu1 %vm90_vm0, %v71_v36  ;;  %1081 = vmatpush3.bf16.msra.mxu0 %v1139_v57  ;;  %v1347_v63 = vld [vmem:[%s1599_s2] ss:$0 sm:$0xff] }
  0x12   :  { %1037 = vmatpush3.bf16.msra.mxu1 %v1133_v37  ;;  %1082 = vmatprep.subr.bf16.mxu0 %v1140_v58 }
  0x13   :  { %1038 = vmatprep.subr.bf16.mxu1 %v1134_v44 }
  0x15   :  { %1083 = vmatpush3.bf16.msra.mxu0 %v1140_v58 }
  0x16   :  { %1009 = vmatmul.mubr.msk.bf16.gmra.mrb[8].mxu0 %vm90_vm0, %v64_v38  ;;  %1039 = vmatpush3.bf16.msra.mxu1 %v1134_v44 }
  0x17   :  { %1012 = vmatprep.mubr.msk.bf16.mxu0 %vm90_vm0, %v65_v39  ;;  %1040 = vmatprep.subr.bf16.mxu1 %v1135_v49 }
  0x18   :  { %1025 = vmatmul.mubr.msk.bf16.gmra.mrb[8].mxu1 %vm90_vm0, %v72_v45  ;;  %1084 = vmatprep.subr.bf16.mxu0 %v1141_v59 }
  0x19   :  { %1028 = vmatprep.mubr.msk.bf16.mxu1 %vm90_vm0, %v73_v48  ;;  %1085 = vmatpush3.bf16.msra.mxu0 %v1141_v59 }
  0x1a   :  { %1041 = vmatpush3.bf16.msra.mxu1 %v1135_v49  ;;  %1086 = vmatprep.subr.bf16.mxu0 %v1142_v60 }
  0x1b   :  { %1042 = vmatprep.subr.bf16.mxu1 %v1136_v53 }
  0x1d   :  { %1087 = vmatpush3.bf16.msra.mxu0 %v1142_v60 }
  0x1e   :  { %1013 = vmatmul.mubr.msk.bf16.gmra.mrb[12].mxu0 %vm90_vm0, %v66_v50  ;;  %1043 = vmatpush3.bf16.msra.mxu1 %v1136_v53 }
  0x1f   :  { %1044 = vmatprep.subr.bf16.mxu1 %v1137_v55  ;;  %1088 = vmatprep.subr.bf16.mxu0 %v1143_v61 }
  0x20   :  { %1029 = vmatmul.mubr.msk.bf16.gmra.mrb[12].mxu1 %vm90_vm0, %v74_v54 }
  0x21   :  { %1089 = vmatpush3.bf16.msra.mxu0 %v1143_v61 }
  0x22   :  { %1045 = vmatpush3.bf16.msra.mxu1 %v1137_v55  ;;  %1090 = vmatprep.subr.bf16.mxu0 %v1144_v62 }
  0x23   :  { %1046 = vmatprep.subr.bf16.mxu1 %v1138_v56 }
  0x25   :  { %1091 = vmatpush3.bf16.msra.mxu0 %v1144_v62 }
  0x26   :  { %1047 = vmatpush3.bf16.msra.mxu1 %v1138_v56 }
  0xd9   :  { %v1002_v0 = vpop.f32.mrb[0].mxu0 }
  0xda   :  { %v182_v1 = vadd.f32 %v1002_v0, %v1347_v63  ;;  %v173_v2 = vpop.f32.mrb[1].mxu0 }
  0xdb   :  { %v174_v3 = vadd.f32 %v1347_v63, %v173_v2  ;;  %v1003_v4 = vpop.f32.mrb[2].mxu0  ;;  %v1018_v8 = vpop.f32.mrb[0].mxu1 }
  0xdc   :  { %v185_v5 = vadd.f32 %v1003_v4, %v1347_v63  ;;  %v176_v6 = vpop.f32.mrb[3].mxu0  ;;  %v302_v9 = vmax.f32 %v182_v1, 0.0  ;;  %v246_v11 = vadd.f32 %v1018_v8, %v1347_v63  ;;  %v237_v12 = vpop.f32.mrb[1].mxu1 }
  0xdd   :  { %v177_v7 = vadd.f32 %v1347_v63, %v176_v6  ;;  %v300_v13 = vmax.f32 %v174_v3, 0.0  ;;  %v238_v15 = vadd.f32 %v1347_v63, %v237_v12  ;;  %v1019_v16 = vpop.f32.mrb[2].mxu1 }
  0xde   :  { %v303_v10 = vmax.f32 %v185_v5, 0.0  ;;  %v318_v18 = vmax.f32 %v246_v11, 0.0  ;;  %v249_v19 = vadd.f32 %v1019_v16, %v1347_v63  ;;  %v240_v20 = vpop.f32.mrb[3].mxu1 }
  0xdf   :  { %v301_v14 = vmax.f32 %v177_v7, 0.0  ;;  %v316_v23 = vmax.f32 %v238_v15, 0.0  ;;  %v241_v24 = vadd.f32 %v1347_v63, %v240_v20 }
  0xe0   :  { %v333_v17 = vpack.c.bf16 %v303_v10, %v302_v9  ;;  %v319_v27 = vmax.f32 %v249_v19, 0.0 }
  0xe1   :  { %v332_v21 = vpack.c.bf16 %v301_v14, %v300_v13  ;;  %v1006_v22 = vpop.f32.mrb[4].mxu0  ;;  %v317_v30 = vmax.f32 %v241_v24, 0.0 }
  0xe2   :  { %v198_v25 = vadd.f32 %v1006_v22, %v1347_v63  ;;  %v189_v26 = vpop.f32.mrb[5].mxu0  ;;  %v1360_v33 = vpack.c.bf16 %v319_v27, %v318_v18 }
  0xe3   :  { %v190_v28 = vadd.f32 %v1347_v63, %v189_v26  ;;  %v1007_v29 = vpop.f32.mrb[6].mxu0  ;;  %1048 = vmatprep.mubr.bf16.mxu1 %v332_v21  ;;  %v1363_v35 = vpack.c.bf16 %v317_v30, %v316_v23  ;;  %v1022_v36 = vpop.f32.mrb[4].mxu1 }
  0xe4   :  { %v201_v31 = vadd.f32 %v1007_v29, %v1347_v63  ;;  %v192_v32 = vpop.f32.mrb[7].mxu0  ;;  %1049 = vmatmul.mubr.bf16.vlgmr.msra.gmra.mrb[16].mxu1 %v333_v17  ;;  %v306_v37 = vmax.f32 %v198_v25, 0.0  ;;  %v262_v39 = vadd.f32 %v1022_v36, %v1347_v63  ;;  %v253_v40 = vpop.f32.mrb[5].mxu1 }
  0xe5   :  { %v193_v34 = vadd.f32 %v1347_v63, %v192_v32  ;;  %v304_v41 = vmax.f32 %v190_v28, 0.0  ;;  %v254_v43 = vadd.f32 %v1347_v63, %v253_v40  ;;  %v1023_v44 = vpop.f32.mrb[6].mxu1 }
  0xe6   :  { %v307_v38 = vmax.f32 %v201_v31, 0.0  ;;  %v322_v46 = vmax.f32 %v262_v39, 0.0  ;;  %v265_v47 = vadd.f32 %v1023_v44, %v1347_v63  ;;  %v256_v48 = vpop.f32.mrb[7].mxu1 }
  0xe7   :  { %v305_v42 = vmax.f32 %v193_v34, 0.0  ;;  %v320_v51 = vmax.f32 %v254_v43, 0.0  ;;  %v257_v52 = vadd.f32 %v1347_v63, %v256_v48 }
  0xe8   :  { %v335_v45 = vpack.c.bf16 %v307_v38, %v306_v37  ;;  %v323_v55 = vmax.f32 %v265_v47, 0.0 }
  0xe9   :  { %v334_v49 = vpack.c.bf16 %v305_v42, %v304_v41  ;;  %v1010_v50 = vpop.f32.mrb[8].mxu0  ;;  %v321_v58 = vmax.f32 %v257_v52, 0.0 }
  0xea   :  { %v214_v53 = vadd.f32 %v1010_v50, %v1347_v63  ;;  %v205_v54 = vpop.f32.mrb[9].mxu0  ;;  %v343_v61 = vpack.c.bf16 %v323_v55, %v322_v46 }
  0xeb   :  { %v206_v56 = vadd.f32 %v1347_v63, %v205_v54  ;;  %v1011_v57 = vpop.f32.mrb[10].mxu0  ;;  %1052 = vmatprep.mubr.bf16.mxu1 %v334_v49  ;;  %v342_v0 = vpack.c.bf16 %v321_v58, %v320_v51  ;;  %v1026_v1 = vpop.f32.mrb[8].mxu1  ;;  %v1146_v51 = vld [vmem:[%s1598_s5 + $0x38] sm:$0xff]  }
  0xec   :  { %v217_v59 = vadd.f32 %v1011_v57, %v1347_v63  ;;  %v208_v60 = vpop.f32.mrb[11].mxu0  ;;  %1053 = vmatmul.mubr.bf16.gmra.mrb[20].mxu1 %v335_v45  ;;  %v310_v2 = vmax.f32 %v214_v53, 0.0  ;;  %v278_v4 = vadd.f32 %v1026_v1, %v1347_v63  ;;  %v269_v5 = vpop.f32.mrb[9].mxu1 }
  0xed   :  { %v209_v62 = vadd.f32 %v1347_v63, %v208_v60  ;;  %v308_v6 = vmax.f32 %v206_v56, 0.0  ;;  %v270_v8 = vadd.f32 %v1347_v63, %v269_v5  ;;  %v1027_v9 = vpop.f32.mrb[10].mxu1 }
  0xee   :  { %v311_v3 = vmax.f32 %v217_v59, 0.0  ;;  %v326_v11 = vmax.f32 %v278_v4, 0.0  ;;  %v281_v12 = vadd.f32 %v1027_v9, %v1347_v63  ;;  %v272_v13 = vpop.f32.mrb[11].mxu1 }
  0xef   :  { %v309_v7 = vmax.f32 %v209_v62, 0.0  ;;  %v324_v16 = vmax.f32 %v270_v8, 0.0  ;;  %v273_v17 = vadd.f32 %v1347_v63, %v272_v13 }
  0xf0   :  { %v337_v10 = vpack.c.bf16 %v311_v3, %v310_v2  ;;  %v327_v20 = vmax.f32 %v281_v12, 0.0 }
  0xf1   :  { %v336_v14 = vpack.c.bf16 %v309_v7, %v308_v6  ;;  %v1014_v15 = vpop.f32.mrb[12].mxu0  ;;  %v325_v23 = vmax.f32 %v273_v17, 0.0 }
  0xf2   :  { %v230_v18 = vadd.f32 %v1014_v15, %v1347_v63  ;;  %v221_v19 = vpop.f32.mrb[13].mxu0  ;;  %v345_v26 = vpack.c.bf16 %v327_v20, %v326_v11 }
  0xf3   :  { %v222_v21 = vadd.f32 %v1347_v63, %v221_v19  ;;  %v1015_v22 = vpop.f32.mrb[14].mxu0  ;;  %1056 = vmatprep.mubr.bf16.mxu1 %v336_v14  ;;  %v344_v28 = vpack.c.bf16 %v325_v23, %v324_v16  ;;  %v1030_v29 = vpop.f32.mrb[12].mxu1 }
  0xf4   :  { %v233_v24 = vadd.f32 %v1015_v22, %v1347_v63  ;;  %v224_v25 = vpop.f32.mrb[15].mxu0  ;;  %1057 = vmatmul.mubr.bf16.gmra.mrb[24].mxu1 %v337_v10  ;;  %v314_v30 = vmax.f32 %v230_v18, 0.0  ;;  %v294_v32 = vadd.f32 %v1030_v29, %v1347_v63  ;;  %v285_v34 = vpop.f32.mrb[13].mxu1 }
  0xf5   :  { %v225_v27 = vadd.f32 %v1347_v63, %v224_v25  ;;  %v312_v36 = vmax.f32 %v222_v21, 0.0  ;;  %v286_v38 = vadd.f32 %v1347_v63, %v285_v34  ;;  %v1031_v39 = vpop.f32.mrb[14].mxu1 }
  0xf6   :  { %v315_v31 = vmax.f32 %v233_v24, 0.0  ;;  %v330_v41 = vmax.f32 %v294_v32, 0.0  ;;  %v297_v42 = vadd.f32 %v1031_v39, %v1347_v63  ;;  %v288_v43 = vpop.f32.mrb[15].mxu1 }
  0xf7   :  { %v313_v37 = vmax.f32 %v225_v27, 0.0  ;;  %v328_v45 = vmax.f32 %v286_v38, 0.0  ;;  %v289_v46 = vadd.f32 %v1347_v63, %v288_v43  ;;  %v1145_v63 = vld [vmem:[%s1598_s5 + $0x30] sm:$0xff]  }
  0xf8   :  { %v339_v40 = vpack.c.bf16 %v315_v31, %v314_v30  ;;  %v331_v47 = vmax.f32 %v297_v42, 0.0  ;;  %1092 = vmatprep.subr.bf16.mxu0 %v1145_v63 }
  0xf9   :  { %v338_v44 = vpack.c.bf16 %v313_v37, %v312_v36  ;;  %v329_v48 = vmax.f32 %v289_v46, 0.0  ;;  %1093 = vmatpush3.bf16.msra.mxu0 %v1145_v63 }
  0xfa   :  { %v347_v49 = vpack.c.bf16 %v331_v47, %v330_v41  ;;  %1094 = vmatprep.subr.bf16.mxu0 %v1146_v51 }
  0xfb   :  { %1060 = vmatprep.mubr.bf16.mxu1 %v338_v44  ;;  %v346_v50 = vpack.c.bf16 %v329_v48, %v328_v45 }
  0xfc   :  { %1061 = vmatmul.mubr.bf16.gmra.mrb[28].mxu1 %v339_v40 }
  0xfd   :  { %1064 = vmatprep.mubr.bf16.mxu1 %v1363_v35  ;;  %1095 = vmatpush3.bf16.msra.mxu0 %v1146_v51 }
 0x104   :  { %1065 = vmatmul.mubr.bf16.gmra.mrb[32].mxu1 %v1360_v33  ;;  %v1396_v33 = vld [vmem:[%s1600_s4] ss:$0 sm:$0xff] }
 0x105   :  { %1068 = vmatprep.mubr.bf16.mxu1 %v342_v0 }
 0x10c   :  { %1069 = vmatmul.mubr.bf16.gmra.mrb[36].mxu1 %v343_v61 }
 0x10d   :  { %1072 = vmatprep.mubr.bf16.mxu1 %v344_v28 }
 0x114   :  { %1073 = vmatmul.mubr.bf16.gmra.mrb[40].mxu1 %v345_v26 }
 0x115   :  { %1076 = vmatprep.mubr.bf16.mxu1 %v346_v50 }
 0x11c   :  { %1077 = vmatmul.mubr.bf16.gmra.mrb[44].mxu1 %v347_v49 }
 0x1b7   :  { %v1050_v35 = vpop.f32.mrb[16].mxu1 }
 0x1b8   :  { %v462_v52 = vadd.f32 %v1050_v35, %v1396_v33  ;;  %v453_v53 = vpop.f32.mrb[17].mxu1 }
 0x1b9   :  { %v454_v54 = vadd.f32 %v1396_v33, %v453_v53  ;;  %v1051_v55 = vpop.f32.mrb[18].mxu1 }
 0x1ba   :  { %v465_v56 = vadd.f32 %v1051_v55, %v1396_v33  ;;  %v456_v57 = vpop.f32.mrb[19].mxu1  ;;  %v582_v59 = vmax.f32 %v462_v52, 0.0 }
 0x1bb   :  { %v457_v58 = vadd.f32 %v1396_v33, %v456_v57  ;;  %v580_v61 = vmax.f32 %v454_v54, 0.0 }
 0x1bc   :  { %v583_v60 = vmax.f32 %v465_v56, 0.0 }
 0x1bd   :  { %v581_v62 = vmax.f32 %v457_v58, 0.0 }
 0x1be   :  { %v613_v0 = vpack.c.bf16 %v583_v60, %v582_v59 }
 0x1bf   :  { %v612_v1 = vpack.c.bf16 %v581_v62, %v580_v61  ;;  %v1054_v2 = vpop.f32.mrb[20].mxu1 }
 0x1c0   :  { %v478_v3 = vadd.f32 %v1054_v2, %v1396_v33  ;;  %v469_v4 = vpop.f32.mrb[21].mxu1 }
 0x1c1   :  { %v470_v5 = vadd.f32 %v1396_v33, %v469_v4  ;;  %v1055_v6 = vpop.f32.mrb[22].mxu1  ;;  %1096 = vmatprep.mubr.bf16.mxu0 %v612_v1 }
 0x1c2   :  { %v481_v7 = vadd.f32 %v1055_v6, %v1396_v33  ;;  %v472_v8 = vpop.f32.mrb[23].mxu1  ;;  %1097 = vmatmul.mubr.bf16.vlgmr.msra.gmra.mrb[16].mxu0 %v613_v0  ;;  %v586_v10 = vmax.f32 %v478_v3, 0.0 }
 0x1c3   :  { %v473_v9 = vadd.f32 %v1396_v33, %v472_v8  ;;  %v584_v12 = vmax.f32 %v470_v5, 0.0 }
 0x1c4   :  { %v587_v11 = vmax.f32 %v481_v7, 0.0 }
 0x1c5   :  { %v585_v13 = vmax.f32 %v473_v9, 0.0 }
 0x1c6   :  { %v615_v14 = vpack.c.bf16 %v587_v11, %v586_v10 }
 0x1c7   :  { %v614_v15 = vpack.c.bf16 %v585_v13, %v584_v12  ;;  %v1058_v16 = vpop.f32.mrb[24].mxu1 }
 0x1c8   :  { %v494_v17 = vadd.f32 %v1058_v16, %v1396_v33  ;;  %v485_v18 = vpop.f32.mrb[25].mxu1 }
 0x1c9   :  { %v486_v19 = vadd.f32 %v1396_v33, %v485_v18  ;;  %v1059_v20 = vpop.f32.mrb[26].mxu1  ;;  %1100 = vmatprep.mubr.bf16.mxu0 %v614_v15 }
 0x1ca   :  { %v497_v21 = vadd.f32 %v1059_v20, %v1396_v33  ;;  %v488_v22 = vpop.f32.mrb[27].mxu1  ;;  %1101 = vmatmul.mubr.bf16.gmra.mrb[20].mxu0 %v615_v14  ;;  %v590_v24 = vmax.f32 %v494_v17, 0.0 }
 0x1cb   :  { %v489_v23 = vadd.f32 %v1396_v33, %v488_v22  ;;  %v588_v26 = vmax.f32 %v486_v19, 0.0 }
 0x1cc   :  { %v591_v25 = vmax.f32 %v497_v21, 0.0 }
 0x1cd   :  { %v589_v27 = vmax.f32 %v489_v23, 0.0 }
 0x1ce   :  { %v617_v28 = vpack.c.bf16 %v591_v25, %v590_v24 }
 0x1cf   :  { %v616_v29 = vpack.c.bf16 %v589_v27, %v588_v26  ;;  %v1062_v30 = vpop.f32.mrb[28].mxu1 }
 0x1d0   :  { %v510_v31 = vadd.f32 %v1062_v30, %v1396_v33  ;;  %v501_v32 = vpop.f32.mrb[29].mxu1 }
 0x1d1   :  { %v502_v34 = vadd.f32 %v1396_v33, %v501_v32  ;;  %v1063_v36 = vpop.f32.mrb[30].mxu1  ;;  %1104 = vmatprep.mubr.bf16.mxu0 %v616_v29 }
 0x1d2   :  { %v513_v37 = vadd.f32 %v1063_v36, %v1396_v33  ;;  %v504_v38 = vpop.f32.mrb[31].mxu1  ;;  %1105 = vmatmul.mubr.bf16.gmra.mrb[24].mxu0 %v617_v28  ;;  %v594_v40 = vmax.f32 %v510_v31, 0.0 }
 0x1d3   :  { %v505_v39 = vadd.f32 %v1396_v33, %v504_v38  ;;  %v592_v42 = vmax.f32 %v502_v34, 0.0 }
 0x1d4   :  { %v595_v41 = vmax.f32 %v513_v37, 0.0 }
 0x1d5   :  { %v593_v43 = vmax.f32 %v505_v39, 0.0  ;;  %v1433_v39 = vld [vmem:[%s1601_s6] ss:$0 sm:$0xff] }
 0x1d6   :  { %v619_v44 = vpack.c.bf16 %v595_v41, %v594_v40 }
 0x1d7   :  { %v618_v45 = vpack.c.bf16 %v593_v43, %v592_v42  ;;  %v1066_v46 = vpop.f32.mrb[32].mxu1 }
 0x1d8   :  { %v526_v47 = vadd.f32 %v1066_v46, %v1396_v33  ;;  %v517_v48 = vpop.f32.mrb[33].mxu1 }
 0x1d9   :  { %v518_v49 = vadd.f32 %v1396_v33, %v517_v48  ;;  %v1067_v50 = vpop.f32.mrb[34].mxu1  ;;  %1108 = vmatprep.mubr.bf16.mxu0 %v618_v45 }
 0x1da   :  { %v529_v63 = vadd.f32 %v1067_v50, %v1396_v33  ;;  %v520_v51 = vpop.f32.mrb[35].mxu1  ;;  %1109 = vmatmul.mubr.bf16.gmra.mrb[28].mxu0 %v619_v44  ;;  %v598_v52 = vmax.f32 %v526_v47, 0.0 }
 0x1db   :  { %v521_v35 = vadd.f32 %v1396_v33, %v520_v51  ;;  %v596_v54 = vmax.f32 %v518_v49, 0.0 }
 0x1dc   :  { %v599_v53 = vmax.f32 %v529_v63, 0.0 }
 0x1dd   :  { %v597_v55 = vmax.f32 %v521_v35, 0.0 }
 0x1de   :  { %v621_v56 = vpack.c.bf16 %v599_v53, %v598_v52 }
 0x1df   :  { %v620_v57 = vpack.c.bf16 %v597_v55, %v596_v54  ;;  %v1070_v58 = vpop.f32.mrb[36].mxu1 }
 0x1e0   :  { %v542_v59 = vadd.f32 %v1070_v58, %v1396_v33  ;;  %v533_v60 = vpop.f32.mrb[37].mxu1 }
 0x1e1   :  { %v534_v61 = vadd.f32 %v1396_v33, %v533_v60  ;;  %v1071_v62 = vpop.f32.mrb[38].mxu1  ;;  %1112 = vmatprep.mubr.bf16.mxu0 %v620_v57 }
 0x1e2   :  { %v545_v0 = vadd.f32 %v1071_v62, %v1396_v33  ;;  %v536_v1 = vpop.f32.mrb[39].mxu1  ;;  %1113 = vmatmul.mubr.bf16.gmra.mrb[32].mxu0 %v621_v56  ;;  %v602_v3 = vmax.f32 %v542_v59, 0.0 }
 0x1e3   :  { %v537_v2 = vadd.f32 %v1396_v33, %v536_v1  ;;  %v600_v5 = vmax.f32 %v534_v61, 0.0 }
 0x1e4   :  { %v603_v4 = vmax.f32 %v545_v0, 0.0 }
 0x1e5   :  { %v601_v6 = vmax.f32 %v537_v2, 0.0 }
 0x1e6   :  { %v623_v7 = vpack.c.bf16 %v603_v4, %v602_v3 }
 0x1e7   :  { %v622_v8 = vpack.c.bf16 %v601_v6, %v600_v5  ;;  %v1074_v9 = vpop.f32.mrb[40].mxu1 }
 0x1e8   :  { %v558_v10 = vadd.f32 %v1074_v9, %v1396_v33  ;;  %v549_v11 = vpop.f32.mrb[41].mxu1 }
 0x1e9   :  { %v550_v12 = vadd.f32 %v1396_v33, %v549_v11  ;;  %v1075_v13 = vpop.f32.mrb[42].mxu1  ;;  %1116 = vmatprep.mubr.bf16.mxu0 %v622_v8 }
 0x1ea   :  { %v561_v14 = vadd.f32 %v1075_v13, %v1396_v33  ;;  %v552_v15 = vpop.f32.mrb[43].mxu1  ;;  %1117 = vmatmul.mubr.bf16.gmra.mrb[36].mxu0 %v623_v7  ;;  %v606_v17 = vmax.f32 %v558_v10, 0.0 }
 0x1eb   :  { %v553_v16 = vadd.f32 %v1396_v33, %v552_v15  ;;  %v604_v19 = vmax.f32 %v550_v12, 0.0 }
 0x1ec   :  { %v607_v18 = vmax.f32 %v561_v14, 0.0 }
 0x1ed   :  { %v605_v20 = vmax.f32 %v553_v16, 0.0 }
 0x1ee   :  { %v625_v21 = vpack.c.bf16 %v607_v18, %v606_v17 }
 0x1ef   :  { %v624_v22 = vpack.c.bf16 %v605_v20, %v604_v19  ;;  %v1078_v23 = vpop.f32.mrb[44].mxu1 }
 0x1f0   :  { %v574_v24 = vadd.f32 %v1078_v23, %v1396_v33  ;;  %v565_v25 = vpop.f32.mrb[45].mxu1 }
 0x1f1   :  { %v566_v26 = vadd.f32 %v1396_v33, %v565_v25  ;;  %v1079_v27 = vpop.f32.mrb[46].mxu1  ;;  %1120 = vmatprep.mubr.bf16.mxu0 %v624_v22 }
 0x1f2   :  { %v577_v28 = vadd.f32 %v1079_v27, %v1396_v33  ;;  %v568_v29 = vpop.f32.mrb[47].mxu1  ;;  %1121 = vmatmul.mubr.bf16.gmra.mrb[40].mxu0 %v625_v21  ;;  %v610_v31 = vmax.f32 %v574_v24, 0.0 }
 0x1f3   :  { %v569_v30 = vadd.f32 %v1396_v33, %v568_v29  ;;  %v608_v34 = vmax.f32 %v566_v26, 0.0 }
 0x1f4   :  { %v611_v32 = vmax.f32 %v577_v28, 0.0 }
 0x1f5   :  { %v609_v36 = vmax.f32 %v569_v30, 0.0 }
 0x1f6   :  { %v627_v37 = vpack.c.bf16 %v611_v32, %v610_v31 }
 0x1f7   :  { %v626_v38 = vpack.c.bf16 %v609_v36, %v608_v34 }
 0x1f9   :  { %1124 = vmatprep.mubr.bf16.mxu0 %v626_v38 }
 0x1fa   :  { %1125 = vmatmul.mubr.bf16.gmra.mrb[44].mxu0 %v627_v37 }
 0x295   :  { %v1098_v40 = vpop.f32.mrb[16].mxu0 }
 0x296   :  { %v742_v41 = vadd.f32 %v1098_v40, %v1433_v39  ;;  %v733_v42 = vpop.f32.mrb[17].mxu0 }
 0x297   :  { %v734_v33 = vadd.f32 %v1433_v39, %v733_v42  ;;  %v1099_v43 = vpop.f32.mrb[18].mxu0 }
 0x298   :  { %863 = vst.msk [vmem:[%s1602_s7 + $0x10] sm:$0xff] %vm860_vm1, %v742_v41  ;;  %v745_v44 = vadd.f32 %v1099_v43, %v1433_v39  ;;  %v736_v45 = vpop.f32.mrb[19].mxu0 }
 0x299   :  { %861 = vst.msk [vmem:[%s1602_s7] sm:$0xff] %vm860_vm1, %v734_v33  ;;  %v737_v46 = vadd.f32 %v1433_v39, %v736_v45 }
 0x29a   :  { %864 = vst.msk [vmem:[%s1602_s7 + $0x18] sm:$0xff] %vm860_vm1, %v745_v44 }
 0x29b   :  { %862 = vst.msk [vmem:[%s1602_s7 + $0x8] sm:$0xff] %vm860_vm1, %v737_v46 }
 0x29d   :  { %v1102_v47 = vpop.f32.mrb[20].mxu0 }
 0x29e   :  { %v758_v48 = vadd.f32 %v1102_v47, %v1433_v39  ;;  %v749_v49 = vpop.f32.mrb[21].mxu0 }
 0x29f   :  { %v750_v50 = vadd.f32 %v1433_v39, %v749_v49  ;;  %v1103_v63 = vpop.f32.mrb[22].mxu0 }
 0x2a0   :  { %867 = vst.msk [vmem:[%s1602_s7 + $0x30] sm:$0xff] %vm860_vm1, %v758_v48  ;;  %v761_v51 = vadd.f32 %v1103_v63, %v1433_v39  ;;  %v752_v35 = vpop.f32.mrb[23].mxu0 }
 0x2a1   :  { %865 = vst.msk [vmem:[%s1602_s7 + $0x20] sm:$0xff] %vm860_vm1, %v750_v50  ;;  %v753_v52 = vadd.f32 %v1433_v39, %v752_v35 }
 0x2a2   :  { %868 = vst.msk [vmem:[%s1602_s7 + $0x38] sm:$0xff] %vm860_vm1, %v761_v51 }
 0x2a3   :  { %866 = vst.msk [vmem:[%s1602_s7 + $0x28] sm:$0xff] %vm860_vm1, %v753_v52 }
 0x2a5   :  { %v1106_v53 = vpop.f32.mrb[24].mxu0 }
 0x2a6   :  { %v774_v54 = vadd.f32 %v1106_v53, %v1433_v39  ;;  %v765_v55 = vpop.f32.mrb[25].mxu0 }
 0x2a7   :  { %v766_v56 = vadd.f32 %v1433_v39, %v765_v55  ;;  %v1107_v57 = vpop.f32.mrb[26].mxu0 }
 0x2a8   :  { %871 = vst.msk [vmem:[%s1602_s7 + $0x50] sm:$0xff] %vm860_vm1, %v774_v54  ;;  %v777_v58 = vadd.f32 %v1107_v57, %v1433_v39  ;;  %v768_v59 = vpop.f32.mrb[27].mxu0 }
 0x2a9   :  { %869 = vst.msk [vmem:[%s1602_s7 + $0x40] sm:$0xff] %vm860_vm1, %v766_v56  ;;  %v769_v60 = vadd.f32 %v1433_v39, %v768_v59 }
 0x2aa   :  { %872 = vst.msk [vmem:[%s1602_s7 + $0x58] sm:$0xff] %vm860_vm1, %v777_v58 }
 0x2ab   :  { %870 = vst.msk [vmem:[%s1602_s7 + $0x48] sm:$0xff] %vm860_vm1, %v769_v60 }
 0x2ad   :  { %v1110_v61 = vpop.f32.mrb[28].mxu0 }
 0x2ae   :  { %v790_v62 = vadd.f32 %v1110_v61, %v1433_v39  ;;  %v781_v0 = vpop.f32.mrb[29].mxu0 }
 0x2af   :  { %v782_v1 = vadd.f32 %v1433_v39, %v781_v0  ;;  %v1111_v2 = vpop.f32.mrb[30].mxu0 }
 0x2b0   :  { %875 = vst.msk [vmem:[%s1602_s7 + $0x70] sm:$0xff] %vm860_vm1, %v790_v62  ;;  %v793_v3 = vadd.f32 %v1111_v2, %v1433_v39  ;;  %v784_v4 = vpop.f32.mrb[31].mxu0 }
 0x2b1   :  { %873 = vst.msk [vmem:[%s1602_s7 + $0x60] sm:$0xff] %vm860_vm1, %v782_v1  ;;  %v785_v5 = vadd.f32 %v1433_v39, %v784_v4 }
 0x2b2   :  { %876 = vst.msk [vmem:[%s1602_s7 + $0x78] sm:$0xff] %vm860_vm1, %v793_v3 }
 0x2b3   :  { %874 = vst.msk [vmem:[%s1602_s7 + $0x68] sm:$0xff] %vm860_vm1, %v785_v5 }
 0x2b5   :  { %v1114_v6 = vpop.f32.mrb[32].mxu0 }
 0x2b6   :  { %v806_v7 = vadd.f32 %v1114_v6, %v1433_v39  ;;  %v797_v8 = vpop.f32.mrb[33].mxu0 }
 0x2b7   :  { %v798_v9 = vadd.f32 %v1433_v39, %v797_v8  ;;  %v1115_v10 = vpop.f32.mrb[34].mxu0 }
 0x2b8   :  { %879 = vst.msk [vmem:[%s1602_s7 + $0x90] sm:$0xff] %vm860_vm1, %v806_v7  ;;  %v809_v11 = vadd.f32 %v1115_v10, %v1433_v39  ;;  %v800_v12 = vpop.f32.mrb[35].mxu0 }
 0x2b9   :  { %877 = vst.msk [vmem:[%s1602_s7 + $0x80] sm:$0xff] %vm860_vm1, %v798_v9  ;;  %v801_v13 = vadd.f32 %v1433_v39, %v800_v12 }
 0x2ba   :  { %880 = vst.msk [vmem:[%s1602_s7 + $0x98] sm:$0xff] %vm860_vm1, %v809_v11 }
 0x2bb   :  { %878 = vst.msk [vmem:[%s1602_s7 + $0x88] sm:$0xff] %vm860_vm1, %v801_v13 }
 0x2bd   :  { %v1118_v14 = vpop.f32.mrb[36].mxu0 }
 0x2be   :  { %v822_v15 = vadd.f32 %v1118_v14, %v1433_v39  ;;  %v813_v16 = vpop.f32.mrb[37].mxu0 }
 0x2bf   :  { %v814_v17 = vadd.f32 %v1433_v39, %v813_v16  ;;  %v1119_v18 = vpop.f32.mrb[38].mxu0 }
 0x2c0   :  { %883 = vst.msk [vmem:[%s1602_s7 + $0xb0] sm:$0xff] %vm860_vm1, %v822_v15  ;;  %v825_v19 = vadd.f32 %v1119_v18, %v1433_v39  ;;  %v816_v20 = vpop.f32.mrb[39].mxu0 }
 0x2c1   :  { %881 = vst.msk [vmem:[%s1602_s7 + $0xa0] sm:$0xff] %vm860_vm1, %v814_v17  ;;  %v817_v21 = vadd.f32 %v1433_v39, %v816_v20 }
 0x2c2   :  { %884 = vst.msk [vmem:[%s1602_s7 + $0xb8] sm:$0xff] %vm860_vm1, %v825_v19 }
 0x2c3   :  { %882 = vst.msk [vmem:[%s1602_s7 + $0xa8] sm:$0xff] %vm860_vm1, %v817_v21 }
 0x2c5   :  { %v1122_v22 = vpop.f32.mrb[40].mxu0 }
 0x2c6   :  { %v838_v23 = vadd.f32 %v1122_v22, %v1433_v39  ;;  %v829_v24 = vpop.f32.mrb[41].mxu0 }
 0x2c7   :  { %v830_v25 = vadd.f32 %v1433_v39, %v829_v24  ;;  %v1123_v26 = vpop.f32.mrb[42].mxu0 }
 0x2c8   :  { %887 = vst.msk [vmem:[%s1602_s7 + $0xd0] sm:$0xff] %vm860_vm1, %v838_v23  ;;  %v841_v27 = vadd.f32 %v1123_v26, %v1433_v39  ;;  %v832_v28 = vpop.f32.mrb[43].mxu0 }
 0x2c9   :  { %885 = vst.msk [vmem:[%s1602_s7 + $0xc0] sm:$0xff] %vm860_vm1, %v830_v25  ;;  %v833_v29 = vadd.f32 %v1433_v39, %v832_v28 }
 0x2ca   :  { %888 = vst.msk [vmem:[%s1602_s7 + $0xd8] sm:$0xff] %vm860_vm1, %v841_v27 }
 0x2cb   :  { %886 = vst.msk [vmem:[%s1602_s7 + $0xc8] sm:$0xff] %vm860_vm1, %v833_v29 }
 0x2cd   :  { %v1126_v30 = vpop.f32.mrb[44].mxu0 }
 0x2ce   :  { %v854_v31 = vadd.f32 %v1126_v30, %v1433_v39  ;;  %v845_v32 = vpop.f32.mrb[45].mxu0 }
 0x2cf   :  { %v846_v34 = vadd.f32 %v1433_v39, %v845_v32  ;;  %v1127_v36 = vpop.f32.mrb[46].mxu0 }
 0x2d0   :  { %891 = vst.msk [vmem:[%s1602_s7 + $0xf0] sm:$0xff] %vm860_vm1, %v854_v31  ;;  %v857_v37 = vadd.f32 %v1127_v36, %v1433_v39  ;;  %v848_v38 = vpop.f32.mrb[47].mxu0 }
 0x2d1   :  { %889 = vst.msk [vmem:[%s1602_s7 + $0xe0] sm:$0xff] %vm860_vm1, %v846_v34  ;;  %v849_v40 = vadd.f32 %v1433_v39, %v848_v38 }
 0x2d2   :  { %892 = vst.msk [vmem:[%s1602_s7 + $0xf8] sm:$0xff] %vm860_vm1, %v857_v37 }
 0x2d3   :  { %890 = vst.msk [vmem:[%s1602_s7 + $0xe8] sm:$0xff] %vm860_vm1, %v849_v40 }

</bundles_post_ra>
